<compile_context>
chip_gen: v7x
topology: tpu7x:2x2x1
jax: 0.10.0
libtpu: 0.0.40
codegen_flags: <defaults>
</compile_context>

<pallas_src>
import functools

import jax
import jax.numpy as jnp
from jax import lax
from jax.experimental import pallas as pl
from jax.experimental.pallas import tpu as pltpu

LANE = 128


def _round_up(x, m):
    return (x + m - 1) // m * m


# ---------------------------------------------------------------------------
# Kernel 1: fused QKV projection (q, k, v emitted as three lane-dense arrays)
# ---------------------------------------------------------------------------
def _qkv_proj_kernel(x_ref, w_ref, q_ref, k_ref, v_ref, *, compute_dtype):
    x = x_ref[0].astype(compute_dtype)                                 # (tm, Dp)
    # Three aligned (Dp, Dp) matmuls instead of slicing a (tm, 3*Dp) intermediate
    # into thirds -> q/k/v stay lane-dense, no relayout copies.
    q_ref[0] = jnp.dot(x, w_ref[0].astype(compute_dtype),
                       preferred_element_type=jnp.float32).astype(q_ref.dtype)
    k_ref[0] = jnp.dot(x, w_ref[1].astype(compute_dtype),
                       preferred_element_type=jnp.float32).astype(k_ref.dtype)
    v_ref[0] = jnp.dot(x, w_ref[2].astype(compute_dtype),
                       preferred_element_type=jnp.float32).astype(v_ref.dtype)


def _qkv_projection(x, w3, *, tm, compute_dtype):
    B, N, Dp = x.shape
    is_bf16 = jnp.dtype(compute_dtype) == jnp.dtype(jnp.bfloat16)
    qkv_dtype = jnp.bfloat16 if is_bf16 else x.dtype
    out_sds = jax.ShapeDtypeStruct((B, N, Dp), qkv_dtype)

    kernel = functools.partial(_qkv_proj_kernel, compute_dtype=compute_dtype)
    x_spec = pl.BlockSpec((1, tm, Dp), lambda b, i: (b, i, 0))
    # Weight: constant across the grid -> keep one resident VMEM copy (no double buffer).
    w_spec = pl.BlockSpec(memory_space=pltpu.MemorySpace.VMEM)
    o_spec = pl.BlockSpec((1, tm, Dp), lambda b, i: (b, i, 0))

    return pl.pallas_call(
        kernel,
        out_shape=(out_sds, out_sds, out_sds),
        grid_spec=pltpu.PrefetchScalarGridSpec(
            num_scalar_prefetch=0,
            grid=(B, N // tm),
            in_specs=[x_spec, w_spec],
            out_specs=(o_spec, o_spec, o_spec),
        ),
        compiler_params=pltpu.CompilerParams(
            dimension_semantics=("parallel", "parallel")),
    )(x, w3)


# ---------------------------------------------------------------------------
# Kernel 2: flash-style attention (online softmax, deferred normalization)
# ---------------------------------------------------------------------------
def _flash_attn_kernel(q_ref, k_ref, v_ref, o_ref, m_sc, l_sc, acc_sc, *,
                       scale, approx_recip):
    ki = pl.program_id(2)

    @pl.when(ki == 0)
    def _():
        m_sc[...] = jnp.full(m_sc.shape, -jnp.inf, dtype=m_sc.dtype)
        l_sc[...] = jnp.zeros(l_sc.shape, dtype=l_sc.dtype)
        acc_sc[...] = jnp.zeros(acc_sc.shape, dtype=acc_sc.dtype)

    q = q_ref[0]                                                        # (tq, Dp)
    k = k_ref[0]                                                        # (tk, Dp)
    # Contract on the shared feature dim directly -> no k.T / XLU transpose.
    s = lax.dot_general(q, k, dimension_numbers=(((1,), (1,)), ((), ())),
                        preferred_element_type=jnp.float32) * scale     # (tq, tk) f32

    # TODO(synk): optional boolean `mask` path (masked_fill with -inf) not implemented;
    # the reference forward is exercised with mask=None.

    m_prev = m_sc[...]
    m_new = jnp.maximum(m_prev, jnp.max(s, axis=-1, keepdims=True))
    alpha = jnp.exp(m_prev - m_new)
    p = jnp.exp(s - m_new)                                              # unnormalized, f32
    l_sc[...] = alpha * l_sc[...] + jnp.sum(p, axis=-1, keepdims=True)
    acc_sc[...] = alpha * acc_sc[...] + jnp.dot(
        p.astype(v_ref.dtype), v_ref[0], preferred_element_type=jnp.float32)
    m_sc[...] = m_new

    @pl.when(ki == pl.num_programs(2) - 1)
    def _():
        # Deferred normalization: one (tq, Dp) multiply by 1/l instead of a per-step
        # (tq, tk) divide; the reciprocal runs on the otherwise-idle EUP slot.
        inv = pl.reciprocal(l_sc[...], approx=approx_recip)
        o_ref[0] = (acc_sc[...] * inv).astype(o_ref.dtype)


def _flash_attention(q, k, v, *, scale, tq, tk, out_dtype, approx_recip):
    B, N, Dp = q.shape
    kernel = functools.partial(_flash_attn_kernel, scale=scale,
                               approx_recip=approx_recip)
    return pl.pallas_call(
        kernel,
        out_shape=jax.ShapeDtypeStruct((B, N, Dp), out_dtype),
        grid_spec=pltpu.PrefetchScalarGridSpec(
            num_scalar_prefetch=0,
            grid=(B, N // tq, N // tk),
            in_specs=[
                pl.BlockSpec((1, tq, Dp), lambda b, i, j: (b, i, 0)),
                pl.BlockSpec((1, tk, Dp), lambda b, i, j: (b, j, 0)),
                pl.BlockSpec((1, tk, Dp), lambda b, i, j: (b, j, 0)),
            ],
            out_specs=pl.BlockSpec((1, tq, Dp), lambda b, i, j: (b, i, 0)),
            scratch_shapes=[
                pltpu.VMEM((tq, 1), jnp.float32),    # running max
                pltpu.VMEM((tq, 1), jnp.float32),    # running sum
                pltpu.VMEM((tq, Dp), jnp.float32),   # output accumulator
            ],
        ),
        compiler_params=pltpu.CompilerParams(
            dimension_semantics=("parallel", "parallel", "arbitrary")),
    )(q, k, v)


# ---------------------------------------------------------------------------
# Wrappers
# ---------------------------------------------------------------------------
def prepare_qkv_weight(w_qkv_pt):
    """Fold the 'b n (d k) -> k b n d' permutation + transpose of the PyTorch
    nn.Linear(dim, 3*dim, bias=False).weight into a (3, Dp, Dp) stack, zero-padded to
    the 128-lane width.  Call once per weight, not per forward pass."""
    three_d, d = w_qkv_pt.shape
    assert three_d == 3 * d
    # q takes output columns 0,3,6,... of x @ W.T (i.e. rows 0::3 of W), k -> 1::3, v -> 2::3.
    w3 = jnp.stack([w_qkv_pt[t::3, :].T for t in range(3)], axis=0)     # (3, D, D)
    d_pad = _round_up(d, LANE)
    if d_pad != d:
        w3 = jnp.pad(w3, ((0, 0), (0, d_pad - d), (0, d_pad - d)))
    return w3


def self_attention(x, w3, *, compute_dtype=jnp.bfloat16):
    """x: (B, N, D).  w3: prepared (3, Dp, Dp) weight from prepare_qkv_weight."""
    assert x.ndim == 3, "3D tensor must be provided"
    B, N, D = x.shape
    Dp = w3.shape[-1]
    scale = float(D) ** -0.5

    x_p = jnp.pad(x, ((0, 0), (0, 0), (0, Dp - D))) if Dp != D else x

    # Tile sizes: 128-row q/kv tiles when the sequence allows it, else the whole (small)
    # sequence.  Per-step VMEM is O(tq*Dp + tk*Dp + tq*tk), well under the 32 MiB scoped
    # default on v6e/v7x even with the resident weight.
    tq = 128 if N % 128 == 0 else N
    tk = 128 if N % 128 == 0 else N

    q, k, v = _qkv_projection(x_p, w3, tm=tq, compute_dtype=compute_dtype)
    is_bf16 = jnp.dtype(compute_dtype) == jnp.dtype(jnp.bfloat16)
    out = _flash_attention(q, k, v, scale=scale, tq=tq, tk=tk,
                           out_dtype=x.dtype, approx_recip=is_bf16)
    if Dp != D:
        out = out[..., :D]
    return out


def _reference(x, w_qkv_pt):
    """Pure-JAX transcription of the PyTorch forward (mask=None)."""
    B, N, D = x.shape
    qkv = jnp.einsum("bnd,ed->bne", x, w_qkv_pt)                        # (B, N, 3D)
    qkv = qkv.reshape(B, N, D, 3)                                       # 'b n (d k)'
    q, k, v = qkv[..., 0], qkv[..., 1], qkv[..., 2]
    scores = jnp.einsum("bid,bjd->bij", q, k) * (float(D) ** -0.5)
    attn = jax.nn.softmax(scores, axis=-1)
    return jnp.einsum("bij,bjd->bid", attn, v)


if __name__ == "__main__":
    B, N, D = 2, 8, 32
    key = jax.random.PRNGKey(0)
    kx, kw = jax.random.split(key)

    x = jax.random.normal(kx, (B, N, D), dtype=jnp.float32)
    # Deterministic init for nn.Linear(dim, 3*dim, bias=False).weight of shape (3*D, D).
    w_qkv = jax.random.normal(kw, (3 * D, D), dtype=jnp.float32) * (float(D) ** -0.5)

    w3 = prepare_qkv_weight(w_qkv)          # hoisted out of the per-call path
    ref = _reference(x, w_qkv)

    # Strict semantic check: f32 MXU path (exact reciprocal).
    out_f32 = jax.block_until_ready(self_attention(x, w3, compute_dtype=jnp.float32))
    assert out_f32.shape == (B, N, D)
    assert jnp.allclose(out_f32, ref, atol=1e-4, rtol=1e-4), "f32 path mismatch vs reference"

    # Performance path: bf16 MXU operands, f32 accumulation/softmax, approx reciprocal.
    out_bf16 = jax.block_until_ready(self_attention(x, w3, compute_dtype=jnp.bfloat16))
    assert out_bf16.shape == (B, N, D)
    assert jnp.allclose(out_bf16, ref, atol=5e-2, rtol=5e-2), "bf16 path mismatch vs reference"

    print("KERNEL_OK")
</pallas_src>

<mosaic_0001>
module attributes {stable_mosaic.version = 11 : i64} {
  func.func @_qkv_proj_kernel(%arg0: i32, %arg1: i32, %arg2: memref<1x8x128xf32, #tpu.memory_space<vmem>>, %arg3: memref<3x128x128xf32, #tpu.memory_space<vmem>>, %arg4: memref<1x8x128xf32, #tpu.memory_space<vmem>>, %arg5: memref<1x8x128xf32, #tpu.memory_space<vmem>>, %arg6: memref<1x8x128xf32, #tpu.memory_space<vmem>>) attributes {dimension_semantics = [#tpu.dimension_semantics<parallel>, #tpu.dimension_semantics<parallel>], iteration_bounds = array<i64: 2, 1>, scalar_prefetch = 0 : i64, scratch_operands = 0 : i64, tpu.core_type = #tpu.core_type<tc>, window_params = [{transform_indices = @transform_0, window_bounds = array<i64: 1, 8, 128>}, {pipeline_mode = #tpu.pipeline_mode<synchronous>, transform_indices = @transform_1, window_bounds = array<i64: 3, 128, 128>}, {transform_indices = @transform_2, window_bounds = array<i64: 1, 8, 128>}, {transform_indices = @transform_3, window_bounds = array<i64: 1, 8, 128>}, {transform_indices = @transform_4, window_bounds = array<i64: 1, 8, 128>}]} {
    %c0 = arith.constant 0 : index
    %c0_0 = arith.constant 0 : index
    %c0_1 = arith.constant 0 : index
    %0 = vector.load %arg2[%c0, %c0_0, %c0_1] : memref<1x8x128xf32, #tpu.memory_space<vmem>>, vector<1x8x128xf32>
    %1 = vector.shape_cast %0 : vector<1x8x128xf32> to vector<8x128xf32>
    %c0_2 = arith.constant 0 : index
    %c0_3 = arith.constant 0 : index
    %c0_4 = arith.constant 0 : index
    %2 = vector.load %arg3[%c0_2, %c0_3, %c0_4] : memref<3x128x128xf32, #tpu.memory_space<vmem>>, vector<1x128x128xf32>
    %3 = vector.shape_cast %2 : vector<1x128x128xf32> to vector<128x128xf32>
    %cst = arith.constant dense<0.000000e+00> : vector<8x128xf32>
    %4 = tpu.matmul %1, %3, %cst {dimension_numbers = #tpu.dot_dimension_numbers<[1], [0], [0], [1], [0, 0, 1, 1], [], []>} : vector<8x128xf32>, vector<128x128xf32>, vector<8x128xf32> -> vector<8x128xf32>
    %c0_5 = arith.constant 0 : index
    %c0_6 = arith.constant 0 : index
    %c0_7 = arith.constant 0 : index
    %5 = vector.load %arg4[%c0_5, %c0_6, %c0_7] : memref<1x8x128xf32, #tpu.memory_space<vmem>>, vector<1x8x128xf32>
    %6 = vector.shape_cast %5 : vector<1x8x128xf32> to vector<8x128xf32>
    %7 = vector.shape_cast %4 : vector<8x128xf32> to vector<1x8x128xf32>
    tpu.vector_store %arg4[%c0_5, %c0_6, %c0_7], %7 {strides = array<i32>} : memref<1x8x128xf32, #tpu.memory_space<vmem>>, vector<1x8x128xf32>,
    %c1 = arith.constant 1 : index
    %c0_8 = arith.constant 0 : index
    %c0_9 = arith.constant 0 : index
    %8 = vector.load %arg3[%c1, %c0_8, %c0_9] : memref<3x128x128xf32, #tpu.memory_space<vmem>>, vector<1x128x128xf32>
    %9 = vector.shape_cast %8 : vector<1x128x128xf32> to vector<128x128xf32>
    %cst_10 = arith.constant dense<0.000000e+00> : vector<8x128xf32>
    %10 = tpu.matmul %1, %9, %cst_10 {dimension_numbers = #tpu.dot_dimension_numbers<[1], [0], [0], [1], [0, 0, 1, 1], [], []>} : vector<8x128xf32>, vector<128x128xf32>, vector<8x128xf32> -> vector<8x128xf32>
    %c0_11 = arith.constant 0 : index
    %c0_12 = arith.constant 0 : index
    %c0_13 = arith.constant 0 : index
    %11 = vector.load %arg5[%c0_11, %c0_12, %c0_13] : memref<1x8x128xf32, #tpu.memory_space<vmem>>, vector<1x8x128xf32>
    %12 = vector.shape_cast %11 : vector<1x8x128xf32> to vector<8x128xf32>
    %13 = vector.shape_cast %10 : vector<8x128xf32> to vector<1x8x128xf32>
    tpu.vector_store %arg5[%c0_11, %c0_12, %c0_13], %13 {strides = array<i32>} : memref<1x8x128xf32, #tpu.memory_space<vmem>>, vector<1x8x128xf32>,
    %c2 = arith.constant 2 : index
    %c0_14 = arith.constant 0 : index
    %c0_15 = arith.constant 0 : index
    %14 = vector.load %arg3[%c2, %c0_14, %c0_15] : memref<3x128x128xf32, #tpu.memory_space<vmem>>, vector<1x128x128xf32>
    %15 = vector.shape_cast %14 : vector<1x128x128xf32> to vector<128x128xf32>
    %cst_16 = arith.constant dense<0.000000e+00> : vector<8x128xf32>
    %16 = tpu.matmul %1, %15, %cst_16 {dimension_numbers = #tpu.dot_dimension_numbers<[1], [0], [0], [1], [0, 0, 1, 1], [], []>} : vector<8x128xf32>, vector<128x128xf32>, vector<8x128xf32> -> vector<8x128xf32>
    %c0_17 = arith.constant 0 : index
    %c0_18 = arith.constant 0 : index
    %c0_19 = arith.constant 0 : index
    %17 = vector.load %arg6[%c0_17, %c0_18, %c0_19] : memref<1x8x128xf32, #tpu.memory_space<vmem>>, vector<1x8x128xf32>
    %18 = vector.shape_cast %17 : vector<1x8x128xf32> to vector<8x128xf32>
    %19 = vector.shape_cast %16 : vector<8x128xf32> to vector<1x8x128xf32>
    tpu.vector_store %arg6[%c0_17, %c0_18, %c0_19], %19 {strides = array<i32>} : memref<1x8x128xf32, #tpu.memory_space<vmem>>, vector<1x8x128xf32>,
    return
  }
  func.func @transform_0(%arg0: i32, %arg1: i32) -> (i32, i32, i32) {
    %c0_i32 = arith.constant 0 : i32
    %c0_i32_0 = arith.constant 0 : i32
    return %arg0, %arg1, %c0_i32 : i32, i32, i32
  }
  func.func @transform_1(%arg0: i32, %arg1: i32) -> (i32, i32, i32) {
    %c0_i32 = arith.constant 0 : i32
    %c0_i32_0 = arith.constant 0 : i32
    %c0_i32_1 = arith.constant 0 : i32
    %c0_i32_2 = arith.constant 0 : i32
    return %c0_i32, %c0_i32_0, %c0_i32_1 : i32, i32, i32
  }
  func.func @transform_2(%arg0: i32, %arg1: i32) -> (i32, i32, i32) {
    %c0_i32 = arith.constant 0 : i32
    %c0_i32_0 = arith.constant 0 : i32
    return %arg0, %arg1, %c0_i32 : i32, i32, i32
  }
  func.func @transform_3(%arg0: i32, %arg1: i32) -> (i32, i32, i32) {
    %c0_i32 = arith.constant 0 : i32
    %c0_i32_0 = arith.constant 0 : i32
    return %arg0, %arg1, %c0_i32 : i32, i32, i32
  }
  func.func @transform_4(%arg0: i32, %arg1: i32) -> (i32, i32, i32) {
    %c0_i32 = arith.constant 0 : i32
    %c0_i32_0 = arith.constant 0 : i32
    return %arg0, %arg1, %c0_i32 : i32, i32, i32
  }
}

</mosaic_0001>

<bundles_post_ra>
// kernel: tpu_custom_call.1
= control target key start
LH: loop header
LB: loop body
LE: loop exit
PB: predicated region body
PF: predicated region fallthrough
CT: control target
= control target key end

     0   :  { %10 = vsyncpa [#allocation3], 0  ;;  %s1642_s0 = inlined_call_operand.hbm [shape: f32[2,8,128], index: 0, kind: input, shape index: {}]   ;;  %s1643_s1 = inlined_call_operand.hbm [shape: f32[3,128,128], index: 1, kind: input, shape index: {}]   ;;  %s1644_s2 = inlined_call_operand.hbm [shape: f32[2,8,128], index: 2, kind: output, shape index: {0}]   ;;  %s1645_s3 = inlined_call_operand.hbm [shape: f32[2,8,128], index: 3, kind: output, shape index: {1}]   ;;  %s1646_s4 = inlined_call_operand.hbm [shape: f32[2,8,128], index: 4, kind: output, shape index: {2}]  }
   0x1   :  { %12 = vsyncpa [#allocation3 + $0x1], 0 }
   0x2   :  { %13 = vsyncpa [#allocation6], 0 }
   0x3   :  { %14 = vsyncpa [#allocation4], 0 }
   0x4   :  { %16 = vsyncpa [#allocation4 + $0x1], 0 }
   0x5   :  { %17 = vsyncpa [#allocation9], 0 }
   0x6   :  { %19 = vsyncpa [#allocation9 + $0x1], 0  ;;  %s1315_s15 = smov 0   ;;  %s1317_s16 = smov 0  }
   0x7   :  { %s1319_s17 = smov 0   ;;  %s1321_s18 = smov 0  }
   0x8   :  { %s1323_s19 = smov 0   ;;  %s1325_s20 = smov 0  }
   0x9 LB: > { %s1346_s21 = sadd.s32 4294967295, %s1278_s20   ;;  %s1650_s22 = sadd.s32 4294967294, %s1278_s20   ;;  %s1278_s20 = sphi %s1325_s20, %s25_s20   ;;  %s1274_s19 = sphi %s1323_s19, %s1670_s19   ;;  %s1270_s18 = sphi %s1321_s18, %s1669_s18   ;;  %s1266_s17 = sphi %s1319_s17, %s1668_s17   ;;  %s1262_s16 = sphi %s1317_s16, %s1667_s16   ;;  %s1258_s15 = sphi %s1315_s15, %s1666_s15  }
   0xa   : > { %p59_p0 = scmp.ne.s32.totalorder %s1262_s16, %s1258_s15  ;;  %p1647_p1 = scmp.eq.s32.totalorder %s1346_s21, 0 }
   0xb   : > { %p112_p3 = scmp.eq.s32.totalorder %s1650_s22, 1  ;;  %p739_p5 = scmp.ge.s32.totalorder %s1278_s20, 1 }
   0xc   : > { %p1357_p4 = por %p1647_p1, %p59_p0  ;;  %p175_p7 = scmp.lt.s32.totalorder %s1278_s20, 3 }
   0xd   : > { %p1362_p6 = por %p112_p3, %p59_p0  ;;  %s1280_s26 = smov [#allocation5]  }
   0xe   : > { %s1651_s23 = scalar_select %p1357_p4, 1, 0 }
   0xf   : > { %s1652_s24 = scalar_select %p1362_p6, 1, 0 }
  0x10   : > { %p1367_p8 = pnand %p739_p5, %p175_p7  ;;  %s187_s27 = sshll.u32 %s1280_s26, 4  ;;  %s188_s27 = int_to_ptr.vmem [resolvable:$true] %s187_s27 }
  0x11   : > { %s37_s29 = sadd.s32 1, %s1274_s19  ;;  %s1074_s6 = scalar_lea.hbm %s1643_s1, 6144 }
  0x12   : > { %s1653_s25 = scalar_select %p1367_p8, 1, 0 }
  0x13   : > { %p998_p9 = pneg %p1367_p8  ;;  %p1075_p12 = scmp.ne.s32.totalorder %s1643_s1, %s1074_s6 }
  0x14   : > { %p1081_p5 = scmp.lt.u32.totalorder %s1074_s6, %s1643_s1 }
  0x15   : > { %p1376_p11 = pnand %p998_p9, %p1647_p1 }
  0x17   : > { %p1076_p13 = pneg %p1376_p11 }
  0x19   : > { %p1077_p0 = pnand %p1076_p13, %p1075_p12 }
  0x1b   : > { %p1078_p3 = pneg %p1077_p0 }
  0x1d   : > { %p1083_p7 = pnand %p1081_p5, %p1078_p3 }
  0x1f   : > { %1086 = shalt.err (!%p1083_p7)
}
  0x20   : > { %s1087_s11 = scalar_lea.vmem %s188_s27, 6144  ;;  %p1095_p2 = scmp.lt.s32.totalorder %s188_s27, %s188_s27 }
  0x21   : > { %p1088_p9 = scmp.ne.s32.totalorder %s188_s27, %s1087_s11  ;;  %p1096_p6 = scmp.lt.s32.totalorder %s1087_s11, %s1087_s11 }
  0x23   : > { %p1090_p10 = pnand %p1088_p9, %p1076_p13  ;;  %p1097_p4 = por %p1096_p6, %p1095_p2 }
  0x25   : > { %p1091_p1 = pneg %p1090_p10 }
  0x27   : > { %p1098_p8 = pnand %p1097_p4, %p1091_p1 }
  0x29   : > { %1101 = shalt.err (!%p1098_p8)
}
  0x2a   : > { %s1281_s12 = smov 128   ;;  %s1282_s13 = smov 8  }
  0x2b   : > { %1001 = dma.hbm_to_vmem [thread:$0]  (!%p1376_p11), %s1643_s1, 6144, %s188_s27, [#allocation6], %s1281_s12, %s1281_s12, %s1282_s13  }
  0x2c   : > { %p39_p1 = scmp.ge.s32.totalorder %s37_s29, 2  ;;  %s46_s30 = sadd.s32 1, %s1266_s17 }
  0x2d   : > { %p53_p2 = scmp.ne.s32.totalorder %s1266_s17, %s1262_s16  ;;  %p54_p4 = scmp.eq.s32.totalorder %s1278_s20, 0 }
  0x2e   : > { %s1672_s29 = smov (%p39_p1, %s37_s29), 0  ;;  %p1656_p8 = scmp.eq.s32.totalorder %s1346_s21, 1 }
  0x2f   : > { %p1403_p6 = por %p54_p4, %p53_p2  ;;  %s41_s28 = ssub.s32 %s1274_s19, %s1672_s29 }
  0x30   : > { %p1409_p10 = por %p1656_p8, %p53_p2  ;;  %p1017_p12 = scmp.lt.s32.totalorder %s1278_s20, 2 }
  0x31   : > { %p44_p11 = scmp.eq.s32.totalorder %s41_s28, 0  ;;  %s201_s27 = sand.u32 1, %s1266_s17  }
  0x32   : > { %s742_s7 = sshll.u32 %s201_s27, 3  ;;  %s743_s9 = sshll.u32 %s1274_s19, 7 }
  0x33   : > { %s1418_s8 = scalar_select %p44_p11, %s1266_s17, %s46_s30  }
  0x34   : > { %s1424_s12 = scalar_lea.hbm %s1642_s0, %s743_s9  ;;  %s205_s13 = scalar_lea.vmem [#allocation2], %s742_s7 }
  0x35   : > { %s213_s14 = sshll.u32 %s205_s13, 4  ;;  %p1430_p13 = pnand %p1017_p12, %p1403_p6  ;;  %s1426_s14 = int_to_ptr.vmem [resolvable:$true] %s213_s14 }
  0x36   : > { %s202_s30 = scalar_lea.sflag [#allocation3], %s201_s27  ;;  %s1102_s28 = scalar_lea.hbm %s1424_s12, 128 }
  0x37   : > { %p1103_p0 = scmp.ne.s32.totalorder %s1424_s12, %s1102_s28  ;;  %p1104_p3 = pneg %p1430_p13 }
  0x38   : > { %s1107_s10 = scalar_lea.hbm %s1642_s0, 256  ;;  %p1108_p9 = scmp.lt.u32.totalorder %s1424_s12, %s1642_s0 }
  0x39   : > { %p1105_p5 = pnand %p1104_p3, %p1103_p0  ;;  %p1109_p1 = scmp.lt.u32.totalorder %s1107_s10, %s1102_s28 }
  0x3a   : > { %p1111_p4 = scmp.lt.u32.totalorder %s1102_s28, %s1424_s12 }
  0x3b   : > { %p1106_p7 = pneg %p1105_p5  ;;  %p1110_p2 = por %p1109_p1, %p1108_p9 }
  0x3d   : > { %p1112_p6 = por %p1111_p4, %p1110_p2 }
  0x3f   : > { %p1113_p8 = pnand %p1112_p6, %p1106_p7 }
  0x41   : > { %1116 = shalt.err (!%p1113_p8)
}
  0x42   : > { %s1117_s27 = scalar_lea.vmem %s1426_s14, 128  ;;  %s1283_s13 = smov [#allocation2]  }
  0x43   : > { %p1118_p12 = scmp.ne.s32.totalorder %s1426_s14, %s1117_s27  ;;  %s1122_s7 = sshll.u32 %s1283_s13, 4  ;;  %s1123_s7 = int_to_ptr.vmem [resolvable:$false] %s1122_s7 }
  0x44   : > { %s1124_s9 = scalar_lea.vmem %s1123_s7, 256  ;;  %p1125_p5 = scmp.lt.s32.totalorder %s1426_s14, %s1123_s7 }
  0x45   : > { %p1120_p11 = pnand %p1118_p12, %p1104_p3  ;;  %p1126_p9 = scmp.lt.s32.totalorder %s1124_s9, %s1117_s27 }
  0x47   : > { %p1121_p0 = pneg %p1120_p11  ;;  %p1127_p1 = por %p1126_p9, %p1125_p5 }
  0x49   : > { %p1128_p2 = pnand %p1127_p1, %p1121_p0 }
  0x4b   : > { %1131 = shalt.err (!%p1128_p2)
}
  0x4c   : > { %1005 = dma.hbm_to_vmem [thread:$0]  (!%p1430_p13), %s1424_s12, 128, %s1426_s14, %s202_s30  }
  0x4d   : > { %p1659_p7 = scmp.ne.s32.totalorder %s1653_s25, 0 }
  0x4e   : > { %s1462_s28 = sand.u32 (!%p1659_p7), 1, %s1262_s16   ;;  %p1660_p3 = scmp.ne.s32.totalorder (!%p1659_p7), %s1651_s23, 0 }
  0x4f   : > { %222 = sbr.rel (%p1659_p7) target bundleno = 397 (0x18d), region = 28  ;;  %s1465_s10 = sshll.u32 (!%p1659_p7), %s1462_s28, 3 }
  0x50   : > { %s225_s5 = scalar_lea.sflag (!%p1659_p7), [#allocation3], %s1462_s28  ;;  %s228_s11 = scalar_lea.vmem (!%p1659_p7), [#allocation2], %s1465_s10 }
  0x56   : > { %1241 = dma.done.wait (%p1660_p3), %s225_s5, 128  }
  0x57   : > { %1243 = vsyncadd (%p1660_p3), %s225_s5, 4294967168  ;;  %p1661_p13 = scmp.eq.s32.totalorder %s1346_s21, 0 }
  0x59   : > { %1245 = dma.done.wait (%p1661_p13), [#allocation6], 6144   ;;  %p1662_p4 = pmov %p1661_p13 }
  0x5a   : > { %v1284_v0 = vmov 0.0|0.0   ;;  %vm1285_vm0 = vmmov 0   ;;  %v1286_v1 = vmov 0.0   ;;  %v268_v2 = vld [vmem:[#allocation5] sm:$0xff]  ;;  %v269_v3 = vld [vmem:[#allocation5 + $0x8] sm:$0xff]  ;;  %v270_v4 = vld [vmem:[#allocation5 + $0x10] sm:$0xff] }
  0x5b   : > { %1247 = vsyncadd (%p1662_p4), [#allocation6], 4294961152  ;;  %914 = vmatprep.subr.bf16.mxu0 %v1284_v0  ;;  %938 = vmatprep.subr.bf16.mxu1 %v1284_v0  ;;  %v915_v5 = vpack.c.bf16 %v269_v3, %v268_v2  ;;  %v271_v6 = vld [vmem:[#allocation5 + $0x18] sm:$0xff]  ;;  %v272_v8 = vld [vmem:[#allocation5 + $0x20] sm:$0xff]  ;;  %s252_s23 = scalar_lea.vmem [#allocation7], %s1465_s10  ;;  %s1511_s12 = sshll.u32 %s1270_s18, 7 }
  0x5c   : > { %841 = vmatprep.mubr.msk.f32.mxu0 %vm1285_vm0, %v1286_v1  ;;  %876 = vmatprep.mubr.msk.f32.mxu1 %vm1285_vm0, %v1286_v1  ;;  %v918_v7 = vpack.c.bf16 %v271_v6, %v270_v4  ;;  %v273_v9 = vld [vmem:[#allocation5 + $0x28] sm:$0xff]  ;;  %v356_v10 = vld [vmem:[#allocation5 + $0x80] sm:$0xff]  ;;  %v358_v14 = vld [vmem:[#allocation5 + $0x90] sm:$0xff]  ;;  %s556_s25 = sshll.u32 %s252_s23, 4  ;;  %s1519_s30 = scalar_lea.hbm %s1644_s2, %s1511_s12  ;;  %s1513_s25 = int_to_ptr.vmem [resolvable:$true] %s556_s25 }
  0x5d   : > { %916 = vmatpush3.bf16.msra.mxu0 %v915_v5  ;;  %v357_v11 = vld [vmem:[#allocation5 + $0x88] sm:$0xff]  ;;  %v921_v13 = vpack.c.bf16 %v273_v9, %v272_v8  ;;  %v359_v15 = vld [vmem:[#allocation5 + $0x98] sm:$0xff]  ;;  %v274_v16 = vld [vmem:[#allocation5 + $0x30] sm:$0xff]  ;;  %s259_s27 = scalar_lea.vmem [#allocation8], %s1465_s10  ;;  %s536_s18 = sand.u32 1, %s1346_s21  }
  0x5e   : > { %917 = vmatprep.subr.bf16.mxu0 %v1284_v0  ;;  %v939_v12 = vpack.c.bf16 %v357_v11, %v356_v10  ;;  %v275_v17 = vld [vmem:[#allocation5 + $0x38] sm:$0xff]  ;;  %v942_v18 = vpack.c.bf16 %v359_v15, %v358_v14  ;;  %v360_v19 = vld [vmem:[#allocation5 + $0xa0] sm:$0xff]  ;;  %v361_v20 = vld [vmem:[#allocation5 + $0xa8] sm:$0xff]  ;;  %s1524_s13 = sshll.u32 %s259_s27, 4  ;;  %s532_s7 = scalar_lea.sflag [#allocation4], %s1462_s28  ;;  %s1550_s13 = int_to_ptr.vmem [resolvable:$true] %s1524_s13 }
  0x5f   : > { %v924_v21 = vpack.c.bf16 %v275_v17, %v274_v16  ;;  %v276_v22 = vld [vmem:[#allocation5 + $0x40] sm:$0xff]  ;;  %v277_v23 = vld [vmem:[#allocation5 + $0x48] sm:$0xff]  ;;  %v945_v24 = vpack.c.bf16 %v361_v20, %v360_v19  ;;  %v362_v25 = vld [vmem:[#allocation5 + $0xb0] sm:$0xff]  ;;  %s1132_s9 = scalar_lea.vmem %s1513_s25, 128  ;;  %s1287_s5 = smov [#allocation7]  }
  0x60   : > { %940 = vmatpush3.bf16.msra.mxu1 %v939_v12  ;;  %v363_v26 = vld [vmem:[#allocation5 + $0xb8] sm:$0xff]  ;;  %v927_v27 = vpack.c.bf16 %v277_v23, %v276_v22  ;;  %v278_v28 = vld [vmem:[#allocation5 + $0x50] sm:$0xff]  ;;  %v364_v31 = vld [vmem:[#allocation5 + $0xc0] sm:$0xff]  ;;  %p1133_p6 = scmp.ne.s32.totalorder %s1513_s25, %s1132_s9 }
  0x61   : > { %919 = vmatpush3.bf16.msra.mxu0 %v918_v7  ;;  %941 = vmatprep.subr.bf16.mxu1 %v1284_v0  ;;  %v279_v29 = vld [vmem:[#allocation5 + $0x58] sm:$0xff]  ;;  %v948_v30 = vpack.c.bf16 %v363_v26, %v362_v25  ;;  %v365_v32 = vld [vmem:[#allocation5 + $0xc8] sm:$0xff]  ;;  %v280_v34 = vld [vmem:[#allocation5 + $0x60] sm:$0xff] }
  0x62   : > { %920 = vmatprep.subr.bf16.mxu0 %v1284_v0  ;;  %v930_v33 = vpack.c.bf16 %v279_v29, %v278_v28  ;;  %v281_v35 = vld [vmem:[#allocation5 + $0x68] sm:$0xff]  ;;  %v951_v36 = vpack.c.bf16 %v365_v32, %v364_v31  ;;  %v366_v37 = vld [vmem:[#allocation5 + $0xd0] sm:$0xff]  ;;  %v367_v38 = vld [vmem:[#allocation5 + $0xd8] sm:$0xff]  ;;  %p1134_p8 = pnand %p1133_p6, %p1409_p10 }
  0x63   : > { %v933_v39 = vpack.c.bf16 %v281_v35, %v280_v34  ;;  %v282_v40 = vld [vmem:[#allocation5 + $0x70] sm:$0xff]  ;;  %v283_v41 = vld [vmem:[#allocation5 + $0x78] sm:$0xff]  ;;  %v954_v42 = vpack.c.bf16 %v367_v38, %v366_v37  ;;  %v368_v43 = vld [vmem:[#allocation5 + $0xe0] sm:$0xff] }
  0x64   : > { %943 = vmatpush3.bf16.msra.mxu1 %v942_v18  ;;  %v369_v44 = vld [vmem:[#allocation5 + $0xe8] sm:$0xff]  ;;  %v936_v45 = vpack.c.bf16 %v283_v41, %v282_v40  ;;  %v444_v46 = vld [vmem:[#allocation5 + $0x100] sm:$0xff]  ;;  %v370_v49 = vld [vmem:[#allocation5 + $0xf0] sm:$0xff]  ;;  %p1135_p12 = pneg %p1134_p8 }
  0x65   : > { %922 = vmatpush3.bf16.msra.mxu0 %v921_v13  ;;  %944 = vmatprep.subr.bf16.mxu1 %v1284_v0  ;;  %v445_v47 = vld [vmem:[#allocation5 + $0x108] sm:$0xff]  ;;  %v957_v48 = vpack.c.bf16 %v369_v44, %v368_v43  ;;  %v371_v50 = vld [vmem:[#allocation5 + $0xf8] sm:$0xff]  ;;  %v446_v53 = vld [vmem:[#allocation5 + $0x110] sm:$0xff] }
  0x66   : > { %923 = vmatprep.subr.bf16.mxu0 %v1284_v0  ;;  %v267_v51 = vld [vmem:[%s228_s11] sm:$0xff]  ;;  %v963_v52 = vpack.c.bf16 %v445_v47, %v444_v46  ;;  %v960_v55 = vpack.c.bf16 %v371_v50, %v370_v49  ;;  %v448_v57 = vld [vmem:[#allocation5 + $0x120] sm:$0xff]  ;;  %v449_v58 = vld [vmem:[#allocation5 + $0x128] sm:$0xff]  ;;  %s1136_s11 = sshll.u32 %s1287_s5, 4  ;;  %s1137_s11 = int_to_ptr.vmem [resolvable:$false] %s1136_s11 }
  0x67   : > { %v447_v54 = vld [vmem:[#allocation5 + $0x118] sm:$0xff]  ;;  %v969_v59 = vpack.c.bf16 %v449_v58, %v448_v57  ;;  %v450_v60 = vld [vmem:[#allocation5 + $0x130] sm:$0xff]  ;;  %v452_v63 = vld [vmem:[#allocation5 + $0x140] sm:$0xff]  ;;  %s1138_s14 = scalar_lea.vmem %s1137_s11, 256  ;;  %p1139_p11 = scmp.lt.s32.totalorder %s1513_s25, %s1137_s11 }
  0x68   : > { %946 = vmatpush3.bf16.msra.mxu1 %v945_v24  ;;  %v966_v56 = vpack.c.bf16 %v447_v54, %v446_v53  ;;  %v451_v61 = vld [vmem:[#allocation5 + $0x138] sm:$0xff]  ;;  %v453_v2 = vld [vmem:[#allocation5 + $0x148] sm:$0xff]  ;;  %v454_v3 = vld [vmem:[#allocation5 + $0x150] sm:$0xff]  ;;  %p1140_p0 = scmp.lt.s32.totalorder %s1138_s14, %s1132_s9 }
  0x69   : > { %925 = vmatpush3.bf16.msra.mxu0 %v924_v21  ;;  %947 = vmatprep.subr.bf16.mxu1 %v1284_v0  ;;  %v972_v62 = vpack.c.bf16 %v451_v61, %v450_v60  ;;  %v455_v4 = vld [vmem:[#allocation5 + $0x158] sm:$0xff]  ;;  %v456_v6 = vld [vmem:[#allocation5 + $0x160] sm:$0xff]  ;;  %v457_v7 = vld [vmem:[#allocation5 + $0x168] sm:$0xff] }
  0x6a   : > { %926 = vmatprep.subr.bf16.mxu0 %v1284_v0  ;;  %v978_v5 = vpack.c.bf16 %v455_v4, %v454_v3  ;;  %v981_v8 = vpack.c.bf16 %v457_v7, %v456_v6  ;;  %v458_v9 = vld [vmem:[#allocation5 + $0x170] sm:$0xff]  ;;  %v459_v10 = vld [vmem:[#allocation5 + $0x178] sm:$0xff]  ;;  %p1141_p5 = por %p1140_p0, %p1139_p11 }
  0x6b   : > { %v984_v11 = vpack.c.bf16 %v459_v10, %v458_v9 }
  0x6c   : > { %949 = vmatpush3.bf16.msra.mxu1 %v948_v30  ;;  %p1142_p9 = pnand %p1141_p5, %p1135_p12 }
  0x6d   : > { %928 = vmatpush3.bf16.msra.mxu0 %v927_v27  ;;  %950 = vmatprep.subr.bf16.mxu1 %v1284_v0 }
  0x6e   : > { %929 = vmatprep.subr.bf16.mxu0 %v1284_v0 }
  0x70   : > { %952 = vmatpush3.bf16.msra.mxu1 %v951_v36 }
  0x71   : > { %931 = vmatpush3.bf16.msra.mxu0 %v930_v33  ;;  %953 = vmatprep.subr.bf16.mxu1 %v1284_v0 }
  0x72   : > { %932 = vmatprep.subr.bf16.mxu0 %v1284_v0 }
  0x74   : > { %955 = vmatpush3.bf16.msra.mxu1 %v954_v42 }
  0x75   : > { %934 = vmatpush3.bf16.msra.mxu0 %v933_v39  ;;  %956 = vmatprep.subr.bf16.mxu1 %v1284_v0 }
  0x76   : > { %935 = vmatprep.subr.bf16.mxu0 %v1284_v0 }
  0x78   : > { %958 = vmatpush3.bf16.msra.mxu1 %v957_v48 }
  0x79   : > { %937 = vmatpush3.bf16.msra.mxu0 %v936_v45  ;;  %959 = vmatprep.subr.bf16.mxu1 %v1284_v0 }
  0x7a   : > { %962 = vmatprep.subr.bf16.mxu0 %v1284_v0 }
  0x7c   : > { %842 = vmatmul.mubr.f32.vlgmr.msra.gmra.mrb[0].mxu0 %v267_v51  ;;  %961 = vmatpush3.bf16.msra.mxu1 %v960_v55 }
  0x7d   : > { %964 = vmatpush3.bf16.msra.mxu0 %v963_v52  ;;  %911 = vmatprep.mubr.msk.f32.mxu0 %vm1285_vm0, %v1286_v1  ;;  %v975_v1 = vpack.c.bf16 %v453_v2, %v452_v63 }
  0x7e   : > { %965 = vmatprep.subr.bf16.mxu0 %v1284_v0 }
  0x7f   : > { %877 = vmatmul.mubr.f32.vlgmr.msra.gmra.mrb[0].mxu1 %v267_v51 }
  0x81   : > { %967 = vmatpush3.bf16.msra.mxu0 %v966_v56 }
  0x82   : > { %968 = vmatprep.subr.bf16.mxu0 %v1284_v0 }
  0x85   : > { %970 = vmatpush3.bf16.msra.mxu0 %v969_v59 }
  0x86   : > { %971 = vmatprep.subr.bf16.mxu0 %v1284_v0 }
  0x89   : > { %973 = vmatpush3.bf16.msra.mxu0 %v972_v62 }
  0x8a   : > { %974 = vmatprep.subr.bf16.mxu0 %v1284_v0 }
  0x8d   : > { %976 = vmatpush3.bf16.msra.mxu0 %v975_v1 }
  0x8e   : > { %977 = vmatprep.subr.bf16.mxu0 %v1284_v0 }
  0x91   : > { %979 = vmatpush3.bf16.msra.mxu0 %v978_v5 }
  0x92   : > { %980 = vmatprep.subr.bf16.mxu0 %v1284_v0 }
  0x95   : > { %982 = vmatpush3.bf16.msra.mxu0 %v981_v8 }
  0x96   : > { %983 = vmatprep.subr.bf16.mxu0 %v1284_v0 }
  0x99   : > { %985 = vmatpush3.bf16.msra.mxu0 %v984_v11 }
  0x9c   : > { %912 = vmatmul.mubr.f32.vlgmr.msra.gmra.mrb[2].mxu0 %v267_v51 }
 0x14f   : > { %v350_v12 = vpop.f32.mrb[0].mxu0 }
 0x150   : > { %354 = vst [vmem:[%s252_s23] sm:$0xff] %v350_v12  ;;  %v843_v0 = vpop.f32.mrb[1].mxu0 }
 0x151   : > { %1145 = shalt.err (!%p1142_p9)
}
 0x152   : > { %s1146_s28 = scalar_lea.hbm %s1519_s30, 128  ;;  %s1150_s5 = scalar_lea.hbm %s1644_s2, 256 }
 0x153   : > { %p1147_p1 = scmp.ne.s32.totalorder %s1519_s30, %s1146_s28  ;;  %p1151_p3 = scmp.lt.u32.totalorder %s1519_s30, %s1644_s2 }
 0x154   : > { %p1152_p13 = scmp.lt.u32.totalorder %s1150_s5, %s1146_s28  ;;  %p1154_p6 = scmp.lt.u32.totalorder %s1146_s28, %s1519_s30 }
 0x155   : > { %p1148_p2 = pnand %p1147_p1, %p1409_p10 }
 0x156   : > { %p1153_p4 = por %p1152_p13, %p1151_p3 }
 0x157   : > { %p1149_p7 = pneg %p1148_p2 }
 0x158   : > { %p1155_p8 = por %p1154_p6, %p1153_p4 }
 0x15a   : > { %p1156_p12 = pnand %p1155_p8, %p1149_p7 }
 0x15c   : > { %1159 = shalt.err (!%p1156_p12)
}
 0x15d   : > { %992 = dma.vmem_to_hbm [thread:$0]  (%p1409_p10), %s1513_s25, 128, %s1519_s30, %s532_s7   ;;  %v438_v13 = vpop.f32.mrb[0].mxu1 }
 0x15e   : > { %s1556_s14 = scalar_lea.hbm %s1645_s3, %s1511_s12  ;;  %442 = vst [vmem:[%s259_s27] sm:$0xff] %v438_v13  ;;  %v878_v14 = vpop.f32.mrb[1].mxu1  ;;  %s1562_s28 = scalar_lea.sflag [#allocation9], %s536_s18 }
 0x15f   : > { %s1160_s23 = scalar_lea.vmem %s1550_s13, 128  ;;  %s1288_s25 = smov [#allocation8]  }
 0x160   : > { %p1161_p11 = scmp.ne.s32.totalorder %s1550_s13, %s1160_s23  ;;  %s1164_s30 = sshll.u32 %s1288_s25, 4  ;;  %s1165_s30 = int_to_ptr.vmem [resolvable:$false] %s1164_s30 }
 0x161   : > { %s1166_s7 = scalar_lea.vmem %s1165_s30, 256  ;;  %p1167_p9 = scmp.lt.s32.totalorder %s1550_s13, %s1165_s30 }
 0x162   : > { %p1162_p0 = pnand %p1161_p11, %p1409_p10  ;;  %p1168_p1 = scmp.lt.s32.totalorder %s1166_s7, %s1160_s23 }
 0x164   : > { %p1163_p5 = pneg %p1162_p0  ;;  %p1169_p2 = por %p1168_p1, %p1167_p9 }
 0x166   : > { %p1170_p7 = pnand %p1169_p2, %p1163_p5 }
 0x168   : > { %1173 = shalt.err (!%p1170_p7)
}
 0x169   : > { %s1174_s21 = scalar_lea.hbm %s1556_s14, 128  ;;  %s1178_s26 = scalar_lea.hbm %s1645_s3, 256 }
 0x16a   : > { %p1175_p3 = scmp.ne.s32.totalorder %s1556_s14, %s1174_s21  ;;  %p1179_p6 = scmp.lt.u32.totalorder %s1556_s14, %s1645_s3 }
 0x16b   : > { %p1180_p8 = scmp.lt.u32.totalorder %s1178_s26, %s1174_s21  ;;  %p1182_p11 = scmp.lt.u32.totalorder %s1174_s21, %s1556_s14 }
 0x16c   : > { %p1176_p13 = pnand %p1175_p3, %p1409_p10 }
 0x16d   : > { %p1181_p12 = por %p1180_p8, %p1179_p6 }
 0x16e   : > { %p1177_p4 = pneg %p1176_p13 }
 0x16f   : > { %p1183_p0 = por %p1182_p11, %p1181_p12 }
 0x171   : > { %p1184_p5 = pnand %p1183_p0, %p1177_p4 }
 0x173   : > { %1187 = shalt.err (!%p1184_p5)
}
 0x174   : > { %993 = dma.vmem_to_hbm [thread:$0]  (%p1409_p10), %s1550_s13, 128, %s1556_s14, %s1562_s28   ;;  %v526_v15 = vpop.f32.mrb[2].mxu0 }
 0x175   : > { %s266_s22 = scalar_lea.vmem [#allocation10], %s1465_s10  ;;  %s1593_s30 = scalar_lea.hbm %s1646_s4, %s1511_s12  ;;  %v913_v16 = vpop.f32.mrb[3].mxu0 }
 0x176   : > { %s584_s9 = sshll.u32 %s266_s22, 4  ;;  %530 = vst [vmem:[%s266_s22] sm:$0xff] %v526_v15  ;;  %s1289_s10 = smov [#allocation10]   ;;  %s1587_s9 = int_to_ptr.vmem [resolvable:$true] %s584_s9 }
 0x177   : > { %s1188_s7 = scalar_lea.vmem %s1587_s9, 128  ;;  %s1192_s13 = sshll.u32 %s1289_s10, 4  ;;  %s1193_s13 = int_to_ptr.vmem [resolvable:$false] %s1192_s13 }
 0x178   : > { %p1189_p9 = scmp.ne.s32.totalorder %s1587_s9, %s1188_s7  ;;  %s1194_s14 = scalar_lea.vmem %s1193_s13, 256 }
 0x179   : > { %p1195_p7 = scmp.lt.s32.totalorder %s1587_s9, %s1193_s13  ;;  %p1196_p3 = scmp.lt.s32.totalorder %s1194_s14, %s1188_s7 }
 0x17a   : > { %p1190_p1 = pnand %p1189_p9, %p1409_p10 }
 0x17b   : > { %p1197_p13 = por %p1196_p3, %p1195_p7 }
 0x17c   : > { %p1191_p2 = pneg %p1190_p1 }
 0x17e   : > { %p1198_p4 = pnand %p1197_p13, %p1191_p2 }
 0x180   : > { %1201 = shalt.err (!%p1198_p4)
}
 0x181   : > { %s1202_s12 = scalar_lea.hbm %s1593_s30, 128  ;;  %s1206_s18 = scalar_lea.hbm %s1646_s4, 256 }
 0x182   : > { %p1203_p6 = scmp.ne.s32.totalorder %s1593_s30, %s1202_s12  ;;  %p1207_p11 = scmp.lt.u32.totalorder %s1593_s30, %s1646_s4 }
 0x183   : > { %p1208_p0 = scmp.lt.u32.totalorder %s1206_s18, %s1202_s12  ;;  %p1210_p9 = scmp.lt.u32.totalorder %s1202_s12, %s1593_s30 }
 0x184   : > { %p1204_p8 = pnand %p1203_p6, %p1409_p10 }
 0x185   : > { %p1209_p5 = por %p1208_p0, %p1207_p11 }
 0x186   : > { %p1205_p12 = pneg %p1204_p8 }
 0x187   : > { %p1211_p1 = por %p1210_p9, %p1209_p5 }
 0x189   : > { %p1212_p2 = pnand %p1211_p1, %p1205_p12 }
 0x18b   : > { %1215 = shalt.err (!%p1212_p2)
}
 0x18c   : > { %994 = dma.vmem_to_hbm [thread:$0]  (%p1409_p10), %s1587_s9, 128, %s1593_s30, %s1562_s28  }
 0x18d PF: > { %s596_s11 = sand.u32 1, %s1258_s15   ;;  %p1663_p7 = scmp.ne.s32.totalorder %s1652_s24, 0 }
 0x18e   : > { %p1664_p3 = scmp.ge.s32.totalorder %s1278_s20, 2  ;;  %s597_s22 = scalar_lea.sflag [#allocation4], %s596_s11 }
 0x190   : > { %p1007_p13 = pnand %p1664_p3, %p1663_p7 }
 0x192   : > { %1249 = dma.done.wait (!%p1007_p13), %s597_s22, 128  }
 0x193   : > { %1251 = vsyncadd (!%p1007_p13), %s597_s22, 4294967168  ;;  %s1665_s23 = sadd.s32 4294967294, %s1278_s20  }
 0x194   : > { %s605_s25 = sand.u32 1, %s1665_s23  }
 0x195   : > { %s606_s7 = scalar_lea.sflag [#allocation9], %s605_s25 }
 0x196   : > { %1253 = dma.done.wait (!%p1007_p13), %s606_s7, 256  }
 0x197   : > { %1255 = vsyncadd (!%p1007_p13), %s606_s7, 4294967040  ;;  %s25_s20 = sadd.s32 1, %s1278_s20   ;;  %s1666_s15 = smov %s1262_s16 }
 0x198   : > { %p22_p10 = scmp.ge.s32.totalorder %s25_s20, 4   ;;  %s1667_s16 = smov %s1266_s17 }
 0x199   : > { %s1668_s17 = smov %s1418_s8  ;;  %s1669_s18 = smov %s1274_s19 }
 0x19a   : > { %s1670_s19 = smov %s1672_s29  ;;  %24 = sbr.rel (!%p22_p10) target bundleno = 9 (0x9), region = 111 }
 0x1a1   :  { %620 = vsyncpa [#allocation3], 1 }
 0x1a2   :  { %622 = vsyncpa [#allocation3 + $0x1], 1 }
 0x1a3   :  { %623 = vsyncpa [#allocation6], 1 }
 0x1a4   :  { %624 = vsyncpa [#allocation4], 1 }
 0x1a5   :  { %626 = vsyncpa [#allocation4 + $0x1], 1 }
 0x1a6   :  { %627 = vsyncpa [#allocation9], 1 }
 0x1a7   :  { %629 = vsyncpa [#allocation9 + $0x1], 1 }

</bundles_post_ra>
